<compile_context>
chip_gen: v7x
topology: tpu7x:2x2x1
jax: 0.10.0
libtpu: 0.0.40
codegen_flags: <defaults>
</compile_context>

<pallas_src>
import jax
import jax.numpy as jnp
from jax.experimental import pallas as pl
from jax.experimental.pallas import tpu as pltpu


def _mlp_trunk(obs_ref, lat_ref, w1o_ref, w1l_ref, b1_ref,
               w2_ref, b2_ref, w3_ref, b3_ref):
    """Shared 3-layer ReLU trunk; returns hidden activations in compute dtype."""
    cd = w2_ref.dtype  # MXU operand dtype (f32 or bf16); accumulation is always f32.

    # Layer 1: split matmul replaces concat([obs, latent]) @ W1.
    h = (jnp.dot(obs_ref[...], w1o_ref[...], preferred_element_type=jnp.float32)
         + jnp.dot(lat_ref[...], w1l_ref[...], preferred_element_type=jnp.float32)
         + b1_ref[...])
    h = jnp.maximum(h, 0.0).astype(cd)

    h = jnp.dot(h, w2_ref[...], preferred_element_type=jnp.float32) + b2_ref[...]
    h = jnp.maximum(h, 0.0).astype(cd)

    h = jnp.dot(h, w3_ref[...], preferred_element_type=jnp.float32) + b3_ref[...]
    return jnp.maximum(h, 0.0).astype(cd)


def _clas_decoder_kernel(obs_ref, lat_ref,
                         w1o_ref, w1l_ref, b1_ref,
                         w2_ref, b2_ref,
                         w3_ref, b3_ref,
                         wmu_ref, bmu_ref,
                         mu_ref):
    h = _mlp_trunk(obs_ref, lat_ref, w1o_ref, w1l_ref, b1_ref,
                   w2_ref, b2_ref, w3_ref, b3_ref)
    mu = jnp.dot(h, wmu_ref[...], preferred_element_type=jnp.float32) + bmu_ref[...]
    mu_ref[...] = mu.astype(mu_ref.dtype)
    # learn_variance=False -> logvar is a constant zero; produced by the wrapper
    # (no HBM write from the kernel).


def _clas_decoder_kernel_lv(obs_ref, lat_ref,
                            w1o_ref, w1l_ref, b1_ref,
                            w2_ref, b2_ref,
                            w3_ref, b3_ref,
                            wmu_ref, bmu_ref,
                            wlv_ref, blv_ref,
                            mu_ref, lv_ref):
    h = _mlp_trunk(obs_ref, lat_ref, w1o_ref, w1l_ref, b1_ref,
                   w2_ref, b2_ref, w3_ref, b3_ref)
    mu = jnp.dot(h, wmu_ref[...], preferred_element_type=jnp.float32) + bmu_ref[...]
    lv = jnp.dot(h, wlv_ref[...], preferred_element_type=jnp.float32) + blv_ref[...]
    mu_ref[...] = mu.astype(mu_ref.dtype)
    lv_ref[...] = lv.astype(lv_ref.dtype)


def clas_decoder_forward(obs, latent_action, params, *, tile_b=1024,
                         compute_dtype=jnp.float32, learn_variance=False):
    """CLASDecoder forward: returns (mu, logvar).

    obs:            [B, obs_dim] float32
    latent_action:  [B, latent_dim] float32
    params: dict w1,b1,w2,b2,w3,b3,wmu,bmu (+ wlogvar,blogvar if learn_variance);
            weights are [in, out], biases [1, out], f32.
    tile_b: batch rows per grid step (multiple of 8). 1024 amortizes the ~0.35 us
            per-step pipeline overhead while keeping double-buffered tiles well
            under the scoped VMEM limit (v7x: 64 MiB physical / 32 MiB default).
    compute_dtype: dtype of MXU operands (jnp.float32 or jnp.bfloat16).
    """
    B, obs_dim = obs.shape
    latent_dim = latent_action.shape[1]
    hidden_dim = params["w2"].shape[0]
    action_dim = params["wmu"].shape[1]

    cd = jnp.dtype(compute_dtype)
    obs_c = obs.astype(cd)
    lat_c = latent_action.astype(cd)

    w1 = params["w1"].astype(cd)
    w1o, w1l = w1[:obs_dim], w1[obs_dim:]          # split once, outside the kernel
    w2, w3, wmu = (params[k].astype(cd) for k in ("w2", "w3", "wmu"))
    b1, b2, b3, bmu = (params[k].astype(jnp.float32)
                       for k in ("b1", "b2", "b3", "bmu"))

    # Batch tiling: full batch if it fits in one tile, else tile_b rows per step.
    tile = B if B <= tile_b else tile_b
    pad = (-B) % tile
    if pad:
        # Zero-pad to a tile multiple (robust for arbitrary B); pad rows are
        # discarded after the call.
        obs_c = jnp.pad(obs_c, ((0, pad), (0, 0)))
        lat_c = jnp.pad(lat_c, ((0, pad), (0, 0)))
    Bp = B + pad
    grid = (Bp // tile,)

    def row_spec(ncols):
        return pl.BlockSpec((tile, ncols), lambda i: (i, 0))

    def full_spec(arr):  # weights/biases resident in VMEM across all grid steps
        return pl.BlockSpec(arr.shape, lambda i: (0, 0))

    n_heads = 2 if learn_variance else 1
    itemsize = cd.itemsize
    flops = 2 * Bp * ((obs_dim + latent_dim) * hidden_dim
                      + 2 * hidden_dim * hidden_dim
                      + n_heads * hidden_dim * action_dim)
    weights = [w1o, w1l, w2, w3, wmu]
    biases = [b1, b2, b3, bmu]
    bytes_accessed = (Bp * (obs_dim + latent_dim) * itemsize            # activations in
                      + n_heads * Bp * action_dim * 4                   # outputs (f32)
                      + sum(int(w.size) * itemsize for w in weights)
                      + sum(int(b.size) * 4 for b in biases))

    in_specs = [
        row_spec(obs_dim), row_spec(latent_dim),
        full_spec(w1o), full_spec(w1l), full_spec(b1),
        full_spec(w2), full_spec(b2),
        full_spec(w3), full_spec(b3),
        full_spec(wmu), full_spec(bmu),
    ]
    out_spec = pl.BlockSpec((tile, action_dim), lambda i: (i, 0))
    compiler_params = pltpu.CompilerParams(dimension_semantics=("parallel",))

    if not learn_variance:
        mu = pl.pallas_call(
            _clas_decoder_kernel,
            out_shape=jax.ShapeDtypeStruct((Bp, action_dim), jnp.float32),
            grid=grid,
            in_specs=in_specs,
            out_specs=out_spec,
            compiler_params=compiler_params,
            cost_estimate=pl.CostEstimate(
                flops=flops, transcendentals=0, bytes_accessed=bytes_accessed),
        )(obs_c, lat_c, w1o, w1l, b1, w2, b2, w3, b3, wmu, bmu)
        mu = mu[:B] if pad else mu
        logvar = jnp.zeros_like(mu)   # constant-zero; materialized for free by XLA
        return mu, logvar

    wlv = params["wlogvar"].astype(cd)
    blv = params["blogvar"].astype(jnp.float32)
    bytes_accessed += int(wlv.size) * itemsize + int(blv.size) * 4
    mu, logvar = pl.pallas_call(
        _clas_decoder_kernel_lv,
        out_shape=(jax.ShapeDtypeStruct((Bp, action_dim), jnp.float32),
                   jax.ShapeDtypeStruct((Bp, action_dim), jnp.float32)),
        grid=grid,
        in_specs=in_specs + [full_spec(wlv), full_spec(blv)],
        out_specs=(out_spec, pl.BlockSpec((tile, action_dim), lambda i: (i, 0))),
        compiler_params=compiler_params,
        cost_estimate=pl.CostEstimate(
            flops=flops, transcendentals=0, bytes_accessed=bytes_accessed),
    )(obs_c, lat_c, w1o, w1l, b1, w2, b2, w3, b3, wmu, bmu, wlv, blv)
    if pad:
        mu, logvar = mu[:B], logvar[:B]
    return mu, logvar


def init_params(key, obs_dim, latent_dim, hidden_dim, action_dim,
                learn_variance=False):
    """Deterministic synthetic parameters (PyTorch-style uniform fan-in init)."""
    input_dim = obs_dim + latent_dim
    dims = [(input_dim, hidden_dim), (hidden_dim, hidden_dim),
            (hidden_dim, hidden_dim), (hidden_dim, action_dim)]
    names = ["1", "2", "3", "mu"]
    if learn_variance:
        dims.append((hidden_dim, action_dim))
        names.append("logvar")
    params = {}
    for (d_in, d_out), name in zip(dims, names):
        key, kw, kb = jax.random.split(key, 3)
        bound = 1.0 / jnp.sqrt(float(d_in))
        params[f"w{name}"] = jax.random.uniform(
            kw, (d_in, d_out), jnp.float32, -bound, bound)
        params[f"b{name}"] = jax.random.uniform(
            kb, (1, d_out), jnp.float32, -bound, bound)
    return params


def _reference_forward(obs, latent_action, params, learn_variance=False):
    """Pure-JAX f32 reference mirroring the PyTorch module."""
    x = jnp.concatenate([obs, latent_action], axis=-1)
    h = jnp.maximum(x @ params["w1"] + params["b1"], 0.0)
    h = jnp.maximum(h @ params["w2"] + params["b2"], 0.0)
    h = jnp.maximum(h @ params["w3"] + params["b3"], 0.0)
    mu = h @ params["wmu"] + params["bmu"]
    if learn_variance:
        logvar = h @ params["wlogvar"] + params["blogvar"]
    else:
        logvar = jnp.zeros_like(mu)
    return mu, logvar


def _reference_forward_bf16(obs, latent_action, params):
    """Reference emulating bf16 MXU operands with f32 accumulation."""
    def r(a):
        return a.astype(jnp.bfloat16).astype(jnp.float32)
    x = jnp.concatenate([r(obs), r(latent_action)], axis=-1)
    h = jnp.maximum(x @ r(params["w1"]) + params["b1"], 0.0)
    h = jnp.maximum(r(h) @ r(params["w2"]) + params["b2"], 0.0)
    h = jnp.maximum(r(h) @ r(params["w3"]) + params["b3"], 0.0)
    mu = r(h) @ r(params["wmu"]) + params["bmu"]
    return mu


if __name__ == "__main__":
    # Small shapes consistent with the module's forward.
    batch, obs_dim, latent_dim, hidden_dim, action_dim = 8, 24, 8, 32, 8

    key = jax.random.PRNGKey(0)
    k_obs, k_lat, k_par, k_obs2, k_lat2, k_par2 = jax.random.split(key, 6)
    obs = jax.random.normal(k_obs, (batch, obs_dim), jnp.float32)
    latent_action = jnp.tanh(
        jax.random.normal(k_lat, (batch, latent_dim), jnp.float32))
    params = init_params(k_par, obs_dim, latent_dim, hidden_dim, action_dim)

    # 1) Small single-tile f32 run (matches PyTorch semantics exactly).
    mu, logvar = clas_decoder_forward(obs, latent_action, params)
    jax.block_until_ready((mu, logvar))
    mu_ref, _ = _reference_forward(obs, latent_action, params)
    assert mu.shape == (batch, action_dim) and logvar.shape == (batch, action_dim)
    assert jnp.allclose(mu, mu_ref, atol=1e-4, rtol=1e-4)
    assert jnp.all(logvar == 0.0)

    # 2) Larger batch exercising the batch-tiled grid + bf16 MXU path.
    big_b = 1024
    obs_b = jax.random.normal(k_obs2, (big_b, obs_dim), jnp.float32)
    lat_b = jnp.tanh(jax.random.normal(k_lat2, (big_b, latent_dim), jnp.float32))
    mu_b, logvar_b = clas_decoder_forward(obs_b, lat_b, params, tile_b=256,
                                          compute_dtype=jnp.bfloat16)
    jax.block_until_ready((mu_b, logvar_b))
    mu_b_ref = _reference_forward_bf16(obs_b, lat_b, params)
    assert mu_b.shape == (big_b, action_dim)
    assert jnp.allclose(mu_b, mu_b_ref, atol=5e-3, rtol=5e-3)
    assert jnp.all(logvar_b == 0.0)

    # 3) Non-multiple batch (exercises wrapper-side padding) + learn_variance head.
    odd_b = 40
    obs_o = jax.random.normal(k_obs2, (odd_b, obs_dim), jnp.float32)
    lat_o = jnp.tanh(jax.random.normal(k_lat2, (odd_b, latent_dim), jnp.float32))
    params_lv = init_params(k_par2, obs_dim, latent_dim, hidden_dim, action_dim,
                            learn_variance=True)
    mu_o, lv_o = clas_decoder_forward(obs_o, lat_o, params_lv, tile_b=16,
                                      learn_variance=True)
    jax.block_until_ready((mu_o, lv_o))
    mu_o_ref, lv_o_ref = _reference_forward(obs_o, lat_o, params_lv,
                                            learn_variance=True)
    assert mu_o.shape == (odd_b, action_dim) and lv_o.shape == (odd_b, action_dim)
    assert jnp.allclose(mu_o, mu_o_ref, atol=1e-4, rtol=1e-4)
    assert jnp.allclose(lv_o, lv_o_ref, atol=1e-4, rtol=1e-4)

    print("KERNEL_OK")
</pallas_src>

<mosaic_0001>
module attributes {stable_mosaic.version = 11 : i64} {
  func.func @_clas_decoder_kernel(%arg0: i32, %arg1: memref<8x24xf32, #tpu.memory_space<vmem>>, %arg2: memref<8x8xf32, #tpu.memory_space<vmem>>, %arg3: memref<24x32xf32, #tpu.memory_space<vmem>>, %arg4: memref<8x32xf32, #tpu.memory_space<vmem>>, %arg5: memref<1x32xf32, #tpu.memory_space<vmem>>, %arg6: memref<32x32xf32, #tpu.memory_space<vmem>>, %arg7: memref<1x32xf32, #tpu.memory_space<vmem>>, %arg8: memref<32x32xf32, #tpu.memory_space<vmem>>, %arg9: memref<1x32xf32, #tpu.memory_space<vmem>>, %arg10: memref<32x8xf32, #tpu.memory_space<vmem>>, %arg11: memref<1x8xf32, #tpu.memory_space<vmem>>, %arg12: memref<8x8xf32, #tpu.memory_space<vmem>>) attributes {dimension_semantics = [#tpu.dimension_semantics<parallel>], iteration_bounds = array<i64: 1>, scalar_prefetch = 0 : i64, scratch_operands = 0 : i64, tpu.core_type = #tpu.core_type<tc>, window_params = [{transform_indices = @transform_0, window_bounds = array<i64: 8, 24>}, {transform_indices = @transform_1, window_bounds = array<i64: 8, 8>}, {pipeline_mode = #tpu.pipeline_mode<synchronous>, transform_indices = @transform_2, window_bounds = array<i64: 24, 32>}, {pipeline_mode = #tpu.pipeline_mode<synchronous>, transform_indices = @transform_3, window_bounds = array<i64: 8, 32>}, {pipeline_mode = #tpu.pipeline_mode<synchronous>, transform_indices = @transform_4, window_bounds = array<i64: 1, 32>}, {pipeline_mode = #tpu.pipeline_mode<synchronous>, transform_indices = @transform_5, window_bounds = array<i64: 32, 32>}, {pipeline_mode = #tpu.pipeline_mode<synchronous>, transform_indices = @transform_6, window_bounds = array<i64: 1, 32>}, {pipeline_mode = #tpu.pipeline_mode<synchronous>, transform_indices = @transform_7, window_bounds = array<i64: 32, 32>}, {pipeline_mode = #tpu.pipeline_mode<synchronous>, transform_indices = @transform_8, window_bounds = array<i64: 1, 32>}, {pipeline_mode = #tpu.pipeline_mode<synchronous>, transform_indices = @transform_9, window_bounds = array<i64: 32, 8>}, {pipeline_mode = #tpu.pipeline_mode<synchronous>, transform_indices = @transform_10, window_bounds = array<i64: 1, 8>}, {transform_indices = @transform_11, window_bounds = array<i64: 8, 8>}]} {
    %c0 = arith.constant 0 : index
    %c0_0 = arith.constant 0 : index
    %0 = vector.load %arg1[%c0, %c0_0] : memref<8x24xf32, #tpu.memory_space<vmem>>, vector<8x24xf32>
    %c0_1 = arith.constant 0 : index
    %c0_2 = arith.constant 0 : index
    %1 = vector.load %arg3[%c0_1, %c0_2] : memref<24x32xf32, #tpu.memory_space<vmem>>, vector<24x32xf32>
    %cst = arith.constant dense<0.000000e+00> : vector<8x32xf32>
    %2 = tpu.matmul %0, %1, %cst {dimension_numbers = #tpu.dot_dimension_numbers<[1], [0], [0], [1], [0, 0, 1, 1], [], []>} : vector<8x24xf32>, vector<24x32xf32>, vector<8x32xf32> -> vector<8x32xf32>
    %c0_3 = arith.constant 0 : index
    %c0_4 = arith.constant 0 : index
    %3 = vector.load %arg2[%c0_3, %c0_4] : memref<8x8xf32, #tpu.memory_space<vmem>>, vector<8x8xf32>
    %c0_5 = arith.constant 0 : index
    %c0_6 = arith.constant 0 : index
    %4 = vector.load %arg4[%c0_5, %c0_6] : memref<8x32xf32, #tpu.memory_space<vmem>>, vector<8x32xf32>
    %cst_7 = arith.constant dense<0.000000e+00> : vector<8x32xf32>
    %5 = tpu.matmul %3, %4, %cst_7 {dimension_numbers = #tpu.dot_dimension_numbers<[1], [0], [0], [1], [0, 0, 1, 1], [], []>} : vector<8x8xf32>, vector<8x32xf32>, vector<8x32xf32> -> vector<8x32xf32>
    %6 = arith.addf %2, %5 : vector<8x32xf32>
    %c0_8 = arith.constant 0 : index
    %c0_9 = arith.constant 0 : index
    %7 = vector.load %arg5[%c0_8, %c0_9] : memref<1x32xf32, #tpu.memory_space<vmem>>, vector<1x32xf32>
    %8 = vector.broadcast %7 : vector<1x32xf32> to vector<8x32xf32>
    %9 = arith.addf %6, %8 : vector<8x32xf32>
    %cst_10 = arith.constant 0.000000e+00 : f32
    %10 = vector.broadcast %cst_10 : f32 to vector<8x32xf32>
    %11 = arith.maximumf %9, %10 : vector<8x32xf32>
    %c0_11 = arith.constant 0 : index
    %c0_12 = arith.constant 0 : index
    %12 = vector.load %arg6[%c0_11, %c0_12] : memref<32x32xf32, #tpu.memory_space<vmem>>, vector<32x32xf32>
    %cst_13 = arith.constant dense<0.000000e+00> : vector<8x32xf32>
    %13 = tpu.matmul %11, %12, %cst_13 {dimension_numbers = #tpu.dot_dimension_numbers<[1], [0], [0], [1], [0, 0, 1, 1], [], []>} : vector<8x32xf32>, vector<32x32xf32>, vector<8x32xf32> -> vector<8x32xf32>
    %c0_14 = arith.constant 0 : index
    %c0_15 = arith.constant 0 : index
    %14 = vector.load %arg7[%c0_14, %c0_15] : memref<1x32xf32, #tpu.memory_space<vmem>>, vector<1x32xf32>
    %15 = vector.broadcast %14 : vector<1x32xf32> to vector<8x32xf32>
    %16 = arith.addf %13, %15 : vector<8x32xf32>
    %cst_16 = arith.constant 0.000000e+00 : f32
    %17 = vector.broadcast %cst_16 : f32 to vector<8x32xf32>
    %18 = arith.maximumf %16, %17 : vector<8x32xf32>
    %c0_17 = arith.constant 0 : index
    %c0_18 = arith.constant 0 : index
    %19 = vector.load %arg8[%c0_17, %c0_18] : memref<32x32xf32, #tpu.memory_space<vmem>>, vector<32x32xf32>
    %cst_19 = arith.constant dense<0.000000e+00> : vector<8x32xf32>
    %20 = tpu.matmul %18, %19, %cst_19 {dimension_numbers = #tpu.dot_dimension_numbers<[1], [0], [0], [1], [0, 0, 1, 1], [], []>} : vector<8x32xf32>, vector<32x32xf32>, vector<8x32xf32> -> vector<8x32xf32>
    %c0_20 = arith.constant 0 : index
    %c0_21 = arith.constant 0 : index
    %21 = vector.load %arg9[%c0_20, %c0_21] : memref<1x32xf32, #tpu.memory_space<vmem>>, vector<1x32xf32>
    %22 = vector.broadcast %21 : vector<1x32xf32> to vector<8x32xf32>
    %23 = arith.addf %20, %22 : vector<8x32xf32>
    %cst_22 = arith.constant 0.000000e+00 : f32
    %24 = vector.broadcast %cst_22 : f32 to vector<8x32xf32>
    %25 = arith.maximumf %23, %24 : vector<8x32xf32>
    %c0_23 = arith.constant 0 : index
    %c0_24 = arith.constant 0 : index
    %26 = vector.load %arg10[%c0_23, %c0_24] : memref<32x8xf32, #tpu.memory_space<vmem>>, vector<32x8xf32>
    %cst_25 = arith.constant dense<0.000000e+00> : vector<8x8xf32>
    %27 = tpu.matmul %25, %26, %cst_25 {dimension_numbers = #tpu.dot_dimension_numbers<[1], [0], [0], [1], [0, 0, 1, 1], [], []>} : vector<8x32xf32>, vector<32x8xf32>, vector<8x8xf32> -> vector<8x8xf32>
    %c0_26 = arith.constant 0 : index
    %c0_27 = arith.constant 0 : index
    %28 = vector.load %arg11[%c0_26, %c0_27] : memref<1x8xf32, #tpu.memory_space<vmem>>, vector<1x8xf32>
    %29 = vector.broadcast %28 : vector<1x8xf32> to vector<8x8xf32>
    %30 = arith.addf %27, %29 : vector<8x8xf32>
    %c0_28 = arith.constant 0 : index
    %c0_29 = arith.constant 0 : index
    %31 = vector.load %arg12[%c0_28, %c0_29] : memref<8x8xf32, #tpu.memory_space<vmem>>, vector<8x8xf32>
    tpu.vector_store %arg12[%c0_28, %c0_29], %30 {strides = array<i32>} : memref<8x8xf32, #tpu.memory_space<vmem>>, vector<8x8xf32>,
    return
  }
  func.func @transform_0(%arg0: i32) -> (i32, i32) {
    %c0_i32 = arith.constant 0 : i32
    %c0_i32_0 = arith.constant 0 : i32
    return %arg0, %c0_i32 : i32, i32
  }
  func.func @transform_1(%arg0: i32) -> (i32, i32) {
    %c0_i32 = arith.constant 0 : i32
    %c0_i32_0 = arith.constant 0 : i32
    return %arg0, %c0_i32 : i32, i32
  }
  func.func @transform_2(%arg0: i32) -> (i32, i32) {
    %c0_i32 = arith.constant 0 : i32
    %c0_i32_0 = arith.constant 0 : i32
    %c0_i32_1 = arith.constant 0 : i32
    return %c0_i32, %c0_i32_0 : i32, i32
  }
  func.func @transform_3(%arg0: i32) -> (i32, i32) {
    %c0_i32 = arith.constant 0 : i32
    %c0_i32_0 = arith.constant 0 : i32
    %c0_i32_1 = arith.constant 0 : i32
    return %c0_i32, %c0_i32_0 : i32, i32
  }
  func.func @transform_4(%arg0: i32) -> (i32, i32) {
    %c0_i32 = arith.constant 0 : i32
    %c0_i32_0 = arith.constant 0 : i32
    %c0_i32_1 = arith.constant 0 : i32
    return %c0_i32, %c0_i32_0 : i32, i32
  }
  func.func @transform_5(%arg0: i32) -> (i32, i32) {
    %c0_i32 = arith.constant 0 : i32
    %c0_i32_0 = arith.constant 0 : i32
    %c0_i32_1 = arith.constant 0 : i32
    return %c0_i32, %c0_i32_0 : i32, i32
  }
  func.func @transform_6(%arg0: i32) -> (i32, i32) {
    %c0_i32 = arith.constant 0 : i32
    %c0_i32_0 = arith.constant 0 : i32
    %c0_i32_1 = arith.constant 0 : i32
    return %c0_i32, %c0_i32_0 : i32, i32
  }
  func.func @transform_7(%arg0: i32) -> (i32, i32) {
    %c0_i32 = arith.constant 0 : i32
    %c0_i32_0 = arith.constant 0 : i32
    %c0_i32_1 = arith.constant 0 : i32
    return %c0_i32, %c0_i32_0 : i32, i32
  }
  func.func @transform_8(%arg0: i32) -> (i32, i32) {
    %c0_i32 = arith.constant 0 : i32
    %c0_i32_0 = arith.constant 0 : i32
    %c0_i32_1 = arith.constant 0 : i32
    return %c0_i32, %c0_i32_0 : i32, i32
  }
  func.func @transform_9(%arg0: i32) -> (i32, i32) {
    %c0_i32 = arith.constant 0 : i32
    %c0_i32_0 = arith.constant 0 : i32
    %c0_i32_1 = arith.constant 0 : i32
    return %c0_i32, %c0_i32_0 : i32, i32
  }
  func.func @transform_10(%arg0: i32) -> (i32, i32) {
    %c0_i32 = arith.constant 0 : i32
    %c0_i32_0 = arith.constant 0 : i32
    %c0_i32_1 = arith.constant 0 : i32
    return %c0_i32, %c0_i32_0 : i32, i32
  }
  func.func @transform_11(%arg0: i32) -> (i32, i32) {
    %c0_i32 = arith.constant 0 : i32
    %c0_i32_0 = arith.constant 0 : i32
    return %arg0, %c0_i32 : i32, i32
  }
}

</mosaic_0001>

<bundles_post_ra>
// kernel: tpu_custom_call.1
= control target key start
LH: loop header
LB: loop body
LE: loop exit
PB: predicated region body
PF: predicated region fallthrough
CT: control target
= control target key end

     0   :  { %16 = vsyncpa [#allocation3], 0  ;;  %s989_s0 = inlined_call_operand.hbm [shape: f32[8,24], index: 0, kind: input, shape index: {}]   ;;  %s990_s1 = inlined_call_operand.hbm [shape: f32[8,8], index: 1, kind: input, shape index: {}]   ;;  %s991_s2 = inlined_call_operand.hbm [shape: f32[24,32], index: 2, kind: input, shape index: {}]   ;;  %s992_s3 = inlined_call_operand.hbm [shape: f32[8,32], index: 3, kind: input, shape index: {}]   ;;  %s993_s4 = inlined_call_operand.vmem [shape: f32[1,32], index: 4, kind: input, shape index: {}]   ;;  %s994_s5 = inlined_call_operand.vmem [shape: f32[32,32], index: 5, kind: input, shape index: {}]   ;;  %s995_s6 = inlined_call_operand.vmem [shape: f32[1,32], index: 6, kind: input, shape index: {}]   ;;  %s996_s7 = inlined_call_operand.vmem [shape: f32[32,32], index: 7, kind: input, shape index: {}]   ;;  %s997_s8 = inlined_call_operand.hbm [shape: f32[1,32], index: 8, kind: input, shape index: {}]   ;;  %s998_s9 = inlined_call_operand.vmem [shape: f32[32,8], index: 9, kind: input, shape index: {}]   ;;  %s999_s10 = inlined_call_operand.vmem [shape: f32[1,8], index: 10, kind: input, shape index: {}]   ;;  %s1000_s11 = inlined_call_operand.hbm [shape: f32[8,8], index: 11, kind: output, shape index: {}]  }
   0x1   :  { %17 = vsyncpa [#allocation6], 0 }
   0x2   :  { %18 = vsyncpa [#allocation9], 0 }
   0x3   :  { %19 = vsyncpa [#allocation4], 0  ;;  %s784_s17 = smov [#allocation5]   ;;  %s785_s19 = smov [#allocation8]  }
   0x4   :  { %s36_s18 = sshll.u32 %s784_s17, 4  ;;  %s58_s20 = sshll.u32 %s785_s19, 4  ;;  %s37_s18 = int_to_ptr.vmem [resolvable:$true] %s36_s18  ;;  %s59_s20 = int_to_ptr.vmem [resolvable:$true] %s58_s20 }
   0x5   :  { %s644_s23 = scalar_lea.hbm %s990_s1, 128 }
   0x6   :  { %p645_p0 = scmp.ne.s32.totalorder %s990_s1, %s644_s23  ;;  %p648_p1 = scmp.lt.u32.totalorder %s644_s23, %s990_s1 }
   0x8   :  { %p650_p2 = pnand %p648_p1, %p645_p0 }
   0xa   :  { %653 = shalt.err (!%p650_p2)
}
   0xb   :  { %s654_s28 = scalar_lea.vmem %s37_s18, 128  ;;  %p659_p4 = scmp.lt.s32.totalorder %s37_s18, %s37_s18 }
   0xc   :  { %p655_p3 = scmp.ne.s32.totalorder %s37_s18, %s654_s28  ;;  %p660_p5 = scmp.lt.s32.totalorder %s654_s28, %s654_s28 }
   0xe   :  { %p661_p6 = por %p660_p5, %p659_p4 }
  0x10   :  { %p662_p7 = pnand %p661_p6, %p655_p3 }
  0x12   :  { %665 = shalt.err (!%p662_p7)
}
  0x13   :  { %39 = dma.hbm_to_vmem [thread:$0]  %s990_s1, 128, %s37_s18, [#allocation6]  }
  0x14   :  { %s666_s14 = scalar_lea.hbm %s992_s3, 128 }
  0x15   :  { %p667_p8 = scmp.ne.s32.totalorder %s992_s3, %s666_s14  ;;  %p670_p9 = scmp.lt.u32.totalorder %s666_s14, %s992_s3 }
  0x17   :  { %p672_p10 = pnand %p670_p9, %p667_p8 }
  0x19   :  { %675 = shalt.err (!%p672_p10)
}
  0x1a   :  { %s676_s21 = scalar_lea.vmem %s59_s20, 128  ;;  %p681_p12 = scmp.lt.s32.totalorder %s59_s20, %s59_s20 }
  0x1b   :  { %p677_p11 = scmp.ne.s32.totalorder %s59_s20, %s676_s21  ;;  %p682_p13 = scmp.lt.s32.totalorder %s676_s21, %s676_s21 }
  0x1d   :  { %p683_p0 = por %p682_p13, %p681_p12 }
  0x1f   :  { %p684_p1 = pnand %p683_p0, %p677_p11 }
  0x21   :  { %687 = shalt.err (!%p684_p1)
}
  0x22   :  { %61 = dma.hbm_to_vmem [thread:$0]  %s992_s3, 128, %s59_s20, [#allocation9]  }
  0x23   :  { %s786_s22 = smov [#allocation2]   ;;  %s787_s24 = smov [#allocation7]  }
  0x24   :  { %s26_s23 = sshll.u32 %s786_s22, 4  ;;  %s45_s25 = sshll.u32 %s787_s24, 4  ;;  %s27_s23 = int_to_ptr.vmem [resolvable:$true] %s26_s23  ;;  %s879_s25 = int_to_ptr.vmem [resolvable:$true] %s45_s25 }
  0x25   :  { %s688_s28 = scalar_lea.hbm %s989_s0, 128 }
  0x26   :  { %p689_p2 = scmp.ne.s32.totalorder %s989_s0, %s688_s28  ;;  %p692_p3 = scmp.lt.u32.totalorder %s688_s28, %s989_s0 }
  0x28   :  { %p694_p4 = pnand %p692_p3, %p689_p2 }
  0x2a   :  { %697 = shalt.err (!%p694_p4)
}
  0x2b   :  { %s698_s3 = scalar_lea.vmem %s27_s23, 128  ;;  %p703_p6 = scmp.lt.s32.totalorder %s27_s23, %s27_s23 }
  0x2c   :  { %p699_p5 = scmp.ne.s32.totalorder %s27_s23, %s698_s3  ;;  %p704_p7 = scmp.lt.s32.totalorder %s698_s3, %s698_s3 }
  0x2e   :  { %p705_p8 = por %p704_p7, %p703_p6 }
  0x30   :  { %p706_p9 = pnand %p705_p8, %p699_p5 }
  0x32   :  { %709 = shalt.err (!%p706_p9)
}
  0x33   :  { %29 = dma.hbm_to_vmem [thread:$0]  %s989_s0, 128, %s27_s23, [#allocation3]  }
  0x34   :  { %s710_s17 = scalar_lea.hbm %s991_s2, 384 }
  0x35   :  { %p711_p10 = scmp.ne.s32.totalorder %s991_s2, %s710_s17  ;;  %p714_p11 = scmp.lt.u32.totalorder %s710_s17, %s991_s2 }
  0x37   :  { %p716_p12 = pnand %p714_p11, %p711_p10 }
  0x39   :  { %719 = shalt.err (!%p716_p12)
}
  0x3a   :  { %s720_s22 = scalar_lea.vmem %s879_s25, 384  ;;  %p725_p0 = scmp.lt.s32.totalorder %s879_s25, %s879_s25 }
  0x3b   :  { %p721_p13 = scmp.ne.s32.totalorder %s879_s25, %s720_s22  ;;  %p726_p1 = scmp.lt.s32.totalorder %s720_s22, %s720_s22 }
  0x3d   :  { %p727_p2 = por %p726_p1, %p725_p0 }
  0x3f   :  { %p728_p3 = pnand %p727_p2, %p721_p13 }
  0x41   :  { %731 = shalt.err (!%p728_p3)
}
  0x42   :  { %s788_s0 = smov 128   ;;  %s789_s23 = smov 8  }
  0x43   :  { %51 = dma.hbm_to_vmem [thread:$0]  %s991_s2, 384, %s879_s25, [#allocation6], %s788_s0, %s788_s0, %s789_s23  }
  0x44   :  { %s790_s27 = smov [#allocation10]   ;;  %s732_s12 = scalar_lea.hbm %s997_s8, 16 }
  0x45   :  { %s76_s28 = sshll.u32 %s790_s27, 4  ;;  %p733_p4 = scmp.ne.s32.totalorder %s997_s8, %s732_s12  ;;  %s77_s28 = int_to_ptr.vmem [resolvable:$true] %s76_s28 }
  0x46   :  { %p736_p5 = scmp.lt.u32.totalorder %s732_s12, %s997_s8 }
  0x48   :  { %p738_p6 = pnand %p736_p5, %p733_p4 }
  0x4a   :  { %741 = shalt.err (!%p738_p6)
}
  0x4b   :  { %s742_s15 = scalar_lea.vmem %s77_s28, 16  ;;  %s746_s2 = scalar_lea.vmem %s77_s28, 32 }
  0x4c   :  { %p743_p7 = scmp.ne.s32.totalorder %s77_s28, %s742_s15  ;;  %p747_p8 = scmp.lt.s32.totalorder %s77_s28, %s77_s28 }
  0x4d   :  { %p748_p9 = scmp.lt.s32.totalorder %s746_s2, %s742_s15 }
  0x4f   :  { %p749_p10 = por %p748_p9, %p747_p8 }
  0x51   :  { %p750_p11 = pnand %p749_p10, %p743_p7 }
  0x53   :  { %753 = shalt.err (!%p750_p11)
}
  0x54   :  { %79 = dma.hbm_to_vmem [thread:$0]  %s997_s8, 16, %s77_s28, [#allocation9]  }
  0x55   :  { %776 = dma.done.wait [#allocation3], 128  }
  0x56   :  { %777 = vsyncadd [#allocation3], 4294967168 }
  0x57   :  { %778 = dma.done.wait [#allocation6], 512  }
  0x58   :  { %779 = vsyncadd [#allocation6], 4294966784 }
  0x59   :  { %780 = dma.done.wait [#allocation9], 144  }
  0x5a   :  { %781 = vsyncadd [#allocation9], 4294967152  ;;  %v791_v0 = vmov 0.0   ;;  %vm792_vm0 = vmmov 0   ;;  %v793_v1 = vmov 0.0|0.0   ;;  %vm105_vm1 = vcmask 64512  }
  0x5b   :  { %565 = vmatprep.subr.mxu1 %v791_v0  ;;  %567 = vmatprep.mubr.msk.f32.mxu1 %vm792_vm0, %v791_v0  ;;  %v104_v2 = vld [vmem:[#allocation8] sm:$0xff]  ;;  %v100_v4 = vld [vmem:[#allocation7] sm:$0xff]  ;;  %v101_v5 = vld [vmem:[#allocation7 + $0x8] sm:$0xff]  ;;  %vm179_vm2 = vcmask 195584   ;;  %vm273_vm3 = vcmask 261120   ;;  %s794_s19 = smov [#allocation11]  }
  0x5c   :  { %615 = vmatprep.subr.bf16.mxu0 %v793_v1  ;;  %587 = vmatprep.mubr.msk.f32.mxu0 %vm792_vm0, %v791_v0  ;;  %v103_v3 = vld [vmem:[#allocation5] sm:$0xff]  ;;  %v613_v6 = vpack.c.bf16 %v101_v5, %v100_v4  ;;  %v102_v7 = vld [vmem:[#allocation7 + $0x10] sm:$0xff]  ;;  %v264_v12 = vld [vmem:[%s994_s5 + $0x10] sm:$0xff]  ;;  %s524_s21 = sshll.u32 %s794_s19, 4  ;;  %s525_s21 = int_to_ptr.vmem [resolvable:$true] %s524_s21 }
  0x5d   :  { %566 = vmatpush3.msra.mxu1 %v104_v2  ;;  %v99_v8 = vld [vmem:[#allocation2] sm:$0xff]  ;;  %v263_v10 = vld [vmem:[%s994_s5 + $0x8] sm:$0xff]  ;;  %v265_v13 = vld [vmem:[%s994_s5 + $0x18] sm:$0xff]  ;;  %p759_p13 = scmp.lt.s32.totalorder %s525_s21, %s525_s21 }
  0x5e   :  { %568 = vmatmul.mubr.msk.f32.vlgmr.msra.gmra.mrb[0].mxu1 %vm105_vm1, %v103_v3  ;;  %612 = vmatprep.subr.bf16.mxu1 %v793_v1  ;;  %v262_v9 = vld [vmem:[%s994_s5] sm:$0xff]  ;;  %v619_v14 = vpack.c.bf16 %v265_v13, %v264_v12  ;;  %v349_v16 = vld [vmem:[%s996_s7 + $0x8] sm:$0xff]  ;;  %v350_v26 = vld [vmem:[%s996_s7 + $0x10] sm:$0xff] }
  0x5f   :  { %576 = vmatprep.mubr.msk.f32.mxu1 %vm792_vm0, %v791_v0  ;;  %614 = vmatpush3.bf16.msra.mxu1 %v613_v6  ;;  %v616_v11 = vpack.c.bf16 %v263_v10, %v262_v9  ;;  %v348_v15 = vld [vmem:[%s996_s7] sm:$0xff]  ;;  %v351_v27 = vld [vmem:[%s996_s7 + $0x18] sm:$0xff]  ;;  %v434_v30 = vld [vmem:[%s998_s9 + $0x8] sm:$0xff] }
  0x60   :  { %574 = vmatprep.subr.mxu1 %v791_v0  ;;  %v622_v17 = vpack.c.bf16 %v349_v16, %v348_v15  ;;  %v537_v21 = vld [vmem:[%s993_s4] ss:$0 sm:$0xff]  ;;  %v625_v28 = vpack.c.bf16 %v351_v27, %v350_v26  ;;  %v435_v37 = vld [vmem:[%s998_s9 + $0x10] sm:$0xff]  ;;  %v436_v38 = vld [vmem:[%s998_s9 + $0x18] sm:$0xff] }
  0x61   :  { %617 = vmatpush3.bf16.msra.mxu0 %v616_v11  ;;  %v433_v29 = vld [vmem:[%s998_s9] sm:$0xff]  ;;  %v631_v39 = vpack.c.bf16 %v436_v38, %v435_v37  ;;  %v540_v40 = vld [vmem:[#allocation10] ss:$0 sm:$0xff]  ;;  %s754_s9 = scalar_lea.vmem %s525_s21, 128 }
  0x62   :  { %618 = vmatprep.subr.bf16.mxu0 %v793_v1  ;;  %v628_v31 = vpack.c.bf16 %v434_v30, %v433_v29  ;;  %v538_v32 = vld [vmem:[%s995_s6] ss:$0 sm:$0xff]  ;;  %p755_p12 = scmp.ne.s32.totalorder %s525_s21, %s754_s9  ;;  %p760_p0 = scmp.lt.s32.totalorder %s754_s9, %s754_s9 }
  0x63   :  { %575 = vmatpush3.msra.mxu1 %v102_v7  ;;  %v542_v45 = vld [vmem:[%s999_s10] ss:$0 sm:$0xff] }
  0x64   :  { %577 = vmatmul.mubr.msk.f32.vlgmr.msra.gmra.mrb[2].mxu1 %vm179_vm2, %v99_v8  ;;  %621 = vmatprep.subr.bf16.mxu1 %v793_v1  ;;  %p761_p1 = por %p760_p0, %p759_p13 }
  0x65   :  { %598 = vmatprep.mubr.msk.f32.mxu1 %vm792_vm0, %v791_v0  ;;  %620 = vmatpush3.bf16.msra.mxu0 %v619_v14 }
  0x66   :  { %627 = vmatprep.subr.bf16.mxu0 %v793_v1  ;;  %623 = vmatpush3.bf16.msra.mxu1 %v622_v17  ;;  %p762_p2 = pnand %p761_p1, %p755_p12 }
  0x67   :  { %624 = vmatprep.subr.bf16.mxu1 %v793_v1 }
  0x6a   :  { %626 = vmatpush3.bf16.msra.mxu1 %v625_v28 }
 0x131   :  { %v175_v18 = vpop.f32.mrb[0].mxu1 }
 0x132   :  { %v569_v19 = vpop.f32.mrb[1].mxu1 }
 0x137   :  { %v249_v20 = vpop.f32.mrb[2].mxu1 }
 0x138   :  { %v250_v22 = vadd.f32 %v249_v20, %v175_v18  ;;  %v578_v23 = vpop.f32.mrb[3].mxu1 }
 0x13a   :  { %v260_v24 = vadd.f32 %v537_v21, %v250_v22 }
 0x13c   :  { %v261_v25 = vmax.f32 %v260_v24, 0.0 }
 0x13e   :  { %588 = vmatmul.mubr.msk.f32.vlgmr.msra.gmra.mrb[0].mxu0 %vm273_vm3, %v261_v25 }
 0x13f   :  { %609 = vmatprep.mubr.msk.f32.mxu0 %vm792_vm0, %v791_v0  ;;  %629 = vmatpush3.bf16.msra.mxu0 %v628_v31 }
 0x140   :  { %630 = vmatprep.subr.bf16.mxu0 %v793_v1 }
 0x143   :  { %632 = vmatpush3.bf16.msra.mxu0 %v631_v39 }
 0x211   :  { %v343_v33 = vpop.f32.mrb[0].mxu0 }
 0x212   :  { %v344_v34 = vadd.f32 %v538_v32, %v343_v33  ;;  %v589_v35 = vpop.f32.mrb[1].mxu0 }
 0x214   :  { %v347_v36 = vmax.f32 %v344_v34, 0.0 }
 0x216   :  { %599 = vmatmul.mubr.msk.f32.vlgmr.msra.gmra.mrb[4].mxu1 %vm273_vm3, %v347_v36 }
 0x2e9   :  { %v428_v41 = vpop.f32.mrb[4].mxu1 }
 0x2ea   :  { %v429_v42 = vadd.f32 %v540_v40, %v428_v41  ;;  %v600_v43 = vpop.f32.mrb[5].mxu1 }
 0x2ec   :  { %v432_v44 = vmax.f32 %v429_v42, 0.0 }
 0x2ee   :  { %610 = vmatmul.mubr.msk.f32.vlgmr.msra.gmra.mrb[2].mxu0 %vm273_vm3, %v432_v44 }
 0x3c1   :  { %v513_v46 = vpop.f32.mrb[2].mxu0 }
 0x3c2   :  { %v514_v47 = vadd.f32 %v542_v45, %v513_v46  ;;  %v611_v48 = vpop.f32.mrb[3].mxu0 }
 0x3c4   :  { %517 = vst.msk [vmem:[#allocation11] sm:$0xff] %vm105_vm1, %v514_v47 }
 0x3c5   :  { %765 = shalt.err (!%p762_p2)
}
 0x3c6   :  { %s766_s22 = scalar_lea.hbm %s1000_s11, 128 }
 0x3c7   :  { %p767_p3 = scmp.ne.s32.totalorder %s1000_s11, %s766_s22  ;;  %p770_p4 = scmp.lt.u32.totalorder %s766_s22, %s1000_s11 }
 0x3c9   :  { %p772_p5 = pnand %p770_p4, %p767_p3 }
 0x3cb   :  { %775 = shalt.err (!%p772_p5)
}
 0x3cc   :  { %527 = dma.vmem_to_hbm [thread:$0]  %s525_s21, 128, %s1000_s11, [#allocation4]  }
 0x3cd   :  { %782 = dma.done.wait [#allocation4], 128  }
 0x3ce   :  { %783 = vsyncadd [#allocation4], 4294967168 }
 0x3cf   :  { %531 = vsyncpa [#allocation3], 1 }
 0x3d0   :  { %532 = vsyncpa [#allocation6], 1 }
 0x3d1   :  { %533 = vsyncpa [#allocation9], 1 }
 0x3d2   :  { %534 = vsyncpa [#allocation4], 1 }

</bundles_post_ra>
